<compile_context>
chip_gen: v7x
topology: tpu7x:2x2x1
jax: 0.10.0
libtpu: 0.0.40
codegen_flags: <defaults>
</compile_context>

<pallas_src>
import functools

import jax
import jax.numpy as jnp
from jax.experimental import pallas as pl
from jax.experimental.pallas import tpu as pltpu


def _ce_kernel(logits_ref, labels_ref, out_ref, m_ref, l_ref, p_ref, *,
               tile_c, c_total, mask_cols, use_mxu_reduce, low_precision_exp):
    """Grid = (N tiles, C tiles); C axis last (innermost, 'arbitrary')."""
    j = pl.program_id(1)
    n_c = pl.num_programs(1)

    # Init per-row running state at the first class tile of each row tile.
    @pl.when(j == 0)
    def _init():
        m_ref[...] = jnp.full(m_ref.shape, -jnp.inf, dtype=jnp.float32)
        l_ref[...] = jnp.zeros(l_ref.shape, dtype=jnp.float32)
        p_ref[...] = jnp.zeros(p_ref.shape, dtype=jnp.float32)

    x = logits_ref[...]                        # (tile_n, tile_c), input dtype
    # Tile-local labels: a (tile_n, 1) subtract instead of a full-tile iota add.
    labels_local = labels_ref[...] - j * tile_c
    lane_ids = jax.lax.broadcasted_iota(jnp.int32, x.shape, 1)

    # Tail-column masking is only needed on the logsumexp path and is statically
    # removed when C divides evenly into tile_c.
    if mask_cols:
        cols_left = c_total - j * tile_c       # scalar
        col_valid = lane_ids < cols_left
        x_lse = jnp.where(col_valid, x, jnp.asarray(-jnp.inf, dtype=x.dtype))
    else:
        x_lse = x

    # Online max (VPU/XLU path), f32 running state.
    tile_max = jnp.max(x_lse, axis=-1, keepdims=True).astype(jnp.float32)
    m_old = m_ref[...]
    m_new = jnp.maximum(m_old, tile_max)

    # exp(x - m). Optional bf16 fast path on v6e/v7x: keep the subtract + exp in
    # bf16 (bf16 VALU + EUP) and recover f32 accuracy in the MXU accumulation.
    if low_precision_exp:
        # Quantize the running max once and use it consistently in both the exp
        # and the f32 finalize so the two agree.
        m_new = m_new.astype(x.dtype).astype(jnp.float32)
        ex = jnp.exp(x_lse - m_new.astype(x.dtype))
    else:
        ex = jnp.exp(x_lse.astype(jnp.float32) - m_new)   # exp(-inf)=0 for padded cols

    # Label-logit pick: compare against tile-local ids (exactly one tile hits).
    hit = lane_ids == labels_local
    picked = jnp.where(hit, x, jnp.asarray(0, dtype=x.dtype))

    if use_mxu_reduce:
        # Class-axis reductions on the (otherwise idle) MXU: skinny matmuls
        # against a ones-(tile_c, 1) vector, accumulating in f32.
        ones_x = jnp.ones((tile_c, 1), dtype=x.dtype)
        sum_ex = jnp.dot(ex, ones_x.astype(ex.dtype),
                         preferred_element_type=jnp.float32)
        picked_sum = jnp.dot(picked, ones_x, preferred_element_type=jnp.float32)
    else:
        sum_ex = jnp.sum(ex.astype(jnp.float32), axis=-1, keepdims=True)
        picked_sum = jnp.sum(picked.astype(jnp.float32), axis=-1, keepdims=True)

    alpha = jnp.exp(m_old - m_new)
    l_ref[...] = alpha * l_ref[...] + sum_ex
    m_ref[...] = m_new
    p_ref[...] += picked_sum

    # Finalize per-row loss on the last class tile.
    @pl.when(j == n_c - 1)
    def _finalize():
        lse = m_ref[...] + jnp.log(l_ref[...])
        out_ref[...] = (lse - p_ref[...]).astype(out_ref.dtype)


def _device_info():
    """(physical VMEM bytes, TensorCores per chip, is_v5) from the device kind."""
    try:
        kind = jax.devices()[0].device_kind.lower().replace(" ", "")
    except Exception:  # pragma: no cover - be robust off-TPU / at trace time
        kind = ""
    is_v7 = ("v7" in kind) or ("tpu7" in kind)
    is_v5 = "v5" in kind
    phys_vmem = (64 << 20) if is_v7 else (128 << 20)
    num_tc = 2 if is_v7 else 1
    return phys_vmem, num_tc, is_v5


def _choose_tiles(n: int, c: int, itemsize: int, *, phys_vmem: int, num_tc: int):
    # Class axis in 128-lane multiples; a moderate tile_c bounds the f32
    # temporaries of the elementwise chain while the C grid axis streams.
    max_c_tile = 2048
    tile_c = c if c <= max_c_tile else max_c_tile

    # Logits block target: ~3 MiB on the 64 MiB-VMEM part (v7x), ~8 MiB on the
    # 128 MiB parts (v5e/v6e are HBM-bound; bigger blocks -> closer to roofline).
    target_bytes = (3 << 20) if phys_vmem <= (64 << 20) else (8 << 20)
    rows = max(8, target_bytes // max(1, tile_c * itemsize))
    tile_n = int(min(1024, rows))
    tile_n = max(8, (tile_n // 8) * 8)          # sublane multiple

    if tile_n >= n:
        tile_n = n                               # full-height block is always legal
        # On multi-TensorCore parts, make sure the "parallel" N axis has >= 2
        # grid steps so both cores get work.
        if num_tc > 1 and n > 8:
            per_core = -(-n // num_tc)           # cdiv
            per_core = max(8, ((per_core + 7) // 8) * 8)
            tile_n = min(tile_n, per_core)
    return tile_n, tile_c


def _vmem_limit(tile_n: int, tile_c: int, itemsize: int, phys_vmem: int) -> int:
    block = tile_n * tile_c
    need = (2 * block * itemsize          # double-buffered logits block
            + 3 * block * 4               # ~3 f32 tile-sized temporaries (ex, mask/iota, sub)
            + 16 * tile_n * 4             # accumulators / labels / output (generous)
            + (1 << 20))                  # slack
    cap = int(phys_vmem * 3 // 4)         # 48 MiB on v7x, 96 MiB on 128 MiB parts
    return int(min(cap, max(32 << 20, need)))


def cross_entropy_loss(logits: jax.Array, labels: jax.Array, *,
                       tile_n: int | None = None,
                       tile_c: int | None = None,
                       low_precision_exp: bool | None = None) -> jax.Array:
    """logits: (N, C) float; labels: (N,) int class indices. Returns scalar f32 mean loss."""
    n, c = logits.shape
    labels2d = labels.astype(jnp.int32).reshape(n, 1)
    itemsize = jnp.dtype(logits.dtype).itemsize

    phys_vmem, num_tc, is_v5 = _device_info()
    auto_n, auto_c = _choose_tiles(n, c, itemsize, phys_vmem=phys_vmem, num_tc=num_tc)
    tile_n = auto_n if tile_n is None else tile_n
    tile_c = auto_c if tile_c is None else tile_c

    if low_precision_exp is None:
        # bf16 elementwise path only where there is a bf16 VALU/EUP (v6e/v7x).
        low_precision_exp = (logits.dtype == jnp.bfloat16) and not is_v5

    grid = (pl.cdiv(n, tile_n), pl.cdiv(c, tile_c))
    mask_cols = (c % tile_c) != 0            # statically elide the tail-column mask
    use_mxu_reduce = tile_c >= 128           # skinny matmuls only for real lane widths

    kernel = functools.partial(
        _ce_kernel, tile_c=tile_c, c_total=c, mask_cols=mask_cols,
        use_mxu_reduce=use_mxu_reduce, low_precision_exp=low_precision_exp)

    cost = pl.CostEstimate(
        flops=8 * n * c,                      # max/sub/select/rescale + 2 skinny dots
        transcendentals=n * c,                # one exp per element
        bytes_accessed=n * c * itemsize + 8 * n)

    per_row = pl.pallas_call(
        kernel,
        out_shape=jax.ShapeDtypeStruct((n, 1), jnp.float32),
        grid_spec=pltpu.PrefetchScalarGridSpec(
            num_scalar_prefetch=0,
            grid=grid,
            in_specs=[
                pl.BlockSpec((tile_n, tile_c), lambda i, j: (i, j)),  # logits tile
                pl.BlockSpec((tile_n, 1), lambda i, j: (i, 0)),       # labels (resident over j)
            ],
            out_specs=pl.BlockSpec((tile_n, 1), lambda i, j: (i, 0)), # per-row loss
            scratch_shapes=[
                pltpu.VMEM((tile_n, 1), jnp.float32),  # running max
                pltpu.VMEM((tile_n, 1), jnp.float32),  # running sum(exp)
                pltpu.VMEM((tile_n, 1), jnp.float32),  # gathered label logit
            ],
        ),
        compiler_params=pltpu.CompilerParams(
            dimension_semantics=("parallel", "arbitrary"),
            vmem_limit_bytes=_vmem_limit(tile_n, tile_c, itemsize, phys_vmem),
        ),
        cost_estimate=cost,
    )(logits, labels2d)

    # Mean reduction over the true N in the wrapper (padded tail rows are clipped
    # on writeback, so only real rows reach this sum).
    return jnp.sum(per_row) / jnp.float32(n)


if __name__ == "__main__":
    key = jax.random.PRNGKey(0)
    k1, k2, k3, k4 = jax.random.split(key, 4)

    def ref_ce(lg, lb):
        logp = jax.nn.log_softmax(lg.astype(jnp.float32), axis=-1)
        return -jnp.mean(logp[jnp.arange(lg.shape[0]), lb])

    # Case 1: small single-block path (batch=8, classes=32); jnp.sum fallback path.
    n1, c1 = 8, 32
    logits1 = jax.random.normal(k1, (n1, c1), dtype=jnp.float32)
    labels1 = jax.random.randint(k2, (n1,), 0, c1, dtype=jnp.int32)
    loss1 = cross_entropy_loss(logits1, labels1)
    jax.block_until_ready(loss1)
    assert jnp.allclose(loss1, ref_ce(logits1, labels1), atol=1e-5, rtol=1e-5), (
        loss1, ref_ce(logits1, labels1))

    # Case 2: forces N tiling with a partial tail block AND C tiling with a
    # partial tail tile (online logsumexp + tail-column mask + MXU reduce path).
    n2, c2 = 20, 160
    logits2 = jax.random.normal(k3, (n2, c2), dtype=jnp.float32)
    labels2 = jax.random.randint(k4, (n2,), 0, c2, dtype=jnp.int32)
    loss2 = cross_entropy_loss(logits2, labels2, tile_n=8, tile_c=128)
    jax.block_until_ready(loss2)
    assert jnp.allclose(loss2, ref_ce(logits2, labels2), atol=1e-5, rtol=1e-5), (
        loss2, ref_ce(logits2, labels2))

    print("KERNEL_OK")
</pallas_src>

<mosaic_0001>
module attributes {stable_mosaic.version = 11 : i64} {
  func.func @_ce_kernel(%arg0: i32, %arg1: i32, %arg2: memref<8x32xf32, #tpu.memory_space<vmem>>, %arg3: memref<8x1xi32, #tpu.memory_space<vmem>>, %arg4: memref<8x1xf32, #tpu.memory_space<vmem>>, %arg5: memref<8x1xf32, #tpu.memory_space<vmem>>, %arg6: memref<8x1xf32, #tpu.memory_space<vmem>>, %arg7: memref<8x1xf32, #tpu.memory_space<vmem>>) attributes {dimension_semantics = [#tpu.dimension_semantics<parallel>, #tpu.dimension_semantics<arbitrary>], iteration_bounds = array<i64: 1, 1>, scalar_prefetch = 0 : i64, scratch_operands = 3 : i64, tpu.core_type = #tpu.core_type<tc>, window_params = [{transform_indices = @transform_0, window_bounds = array<i64: 8, 32>}, {transform_indices = @transform_1, window_bounds = array<i64: 8, 1>}, {transform_indices = @transform_2, window_bounds = array<i64: 8, 1>}]} {
    %c0_i32 = arith.constant 0 : i32
    %0 = arith.cmpi eq, %arg1, %c0_i32 : i32
    %1 = arith.extui %0 : i1 to i32
    %c0_i32_0 = arith.constant 0 : i32
    %2 = arith.cmpi ne, %1, %c0_i32_0 : i32
    scf.if %2 {
      %cst_21 = arith.constant 0xFF800000 : f32
      %37 = vector.broadcast %cst_21 : f32 to vector<8x1xf32>
      %c0_22 = arith.constant 0 : index
      %c0_23 = arith.constant 0 : index
      %38 = vector.load %arg5[%c0_22, %c0_23] : memref<8x1xf32, #tpu.memory_space<vmem>>, vector<8x1xf32>
      tpu.vector_store %arg5[%c0_22, %c0_23], %37 {strides = array<i32>} : memref<8x1xf32, #tpu.memory_space<vmem>>, vector<8x1xf32>,
      %cst_24 = arith.constant 0.000000e+00 : f32
      %39 = vector.broadcast %cst_24 : f32 to vector<8x1xf32>
      %c0_25 = arith.constant 0 : index
      %c0_26 = arith.constant 0 : index
      %40 = vector.load %arg6[%c0_25, %c0_26] : memref<8x1xf32, #tpu.memory_space<vmem>>, vector<8x1xf32>
      tpu.vector_store %arg6[%c0_25, %c0_26], %39 {strides = array<i32>} : memref<8x1xf32, #tpu.memory_space<vmem>>, vector<8x1xf32>,
      %cst_27 = arith.constant 0.000000e+00 : f32
      %41 = vector.broadcast %cst_27 : f32 to vector<8x1xf32>
      %c0_28 = arith.constant 0 : index
      %c0_29 = arith.constant 0 : index
      %42 = vector.load %arg7[%c0_28, %c0_29] : memref<8x1xf32, #tpu.memory_space<vmem>>, vector<8x1xf32>
      tpu.vector_store %arg7[%c0_28, %c0_29], %41 {strides = array<i32>} : memref<8x1xf32, #tpu.memory_space<vmem>>, vector<8x1xf32>,
    } else {
    }
    %c0 = arith.constant 0 : index
    %c0_1 = arith.constant 0 : index
    %3 = vector.load %arg2[%c0, %c0_1] : memref<8x32xf32, #tpu.memory_space<vmem>>, vector<8x32xf32>
    %c0_2 = arith.constant 0 : index
    %c0_3 = arith.constant 0 : index
    %4 = vector.load %arg3[%c0_2, %c0_3] : memref<8x1xi32, #tpu.memory_space<vmem>>, vector<8x1xi32>
    %c32_i32 = arith.constant 32 : i32
    %5 = arith.muli %arg1, %c32_i32 : i32
    %6 = vector.broadcast %5 : i32 to vector<8x1xi32>
    %7 = arith.subi %4, %6 : vector<8x1xi32>
    %8 = tpu.iota {dimensions = array<i32: 1>} : vector<8x32xi32>
    %cst = arith.constant dense<0xFF800000> : vector<8xf32>
    %9 = vector.multi_reduction <maximumf>, %3, %cst [1] : vector<8x32xf32> to vector<8xf32>
    %10 = vector.shape_cast %9 : vector<8xf32> to vector<8x1xf32>
    %c0_4 = arith.constant 0 : index
    %c0_5 = arith.constant 0 : index
    %11 = vector.load %arg5[%c0_4, %c0_5] : memref<8x1xf32, #tpu.memory_space<vmem>>, vector<8x1xf32>
    %12 = arith.maximumf %11, %10 : vector<8x1xf32>
    %13 = vector.broadcast %12 : vector<8x1xf32> to vector<8x32xf32>
    %14 = arith.subf %3, %13 : vector<8x32xf32>
    %15 = math.exp %14 : vector<8x32xf32>
    %16 = vector.broadcast %7 : vector<8x1xi32> to vector<8x32xi32>
    %17 = arith.cmpi eq, %8, %16 : vector<8x32xi32>
    %cst_6 = arith.constant 0.000000e+00 : f32
    %18 = vector.broadcast %cst_6 : f32 to vector<8x32xf32>
    %19 = arith.select %17, %3, %18 : vector<8x32xi1>, vector<8x32xf32>
    %cst_7 = arith.constant dense<0.000000e+00> : vector<8xf32>
    %20 = vector.multi_reduction <add>, %15, %cst_7 [1] : vector<8x32xf32> to vector<8xf32>
    %21 = vector.shape_cast %20 : vector<8xf32> to vector<8x1xf32>
    %cst_8 = arith.constant dense<0.000000e+00> : vector<8xf32>
    %22 = vector.multi_reduction <add>, %19, %cst_8 [1] : vector<8x32xf32> to vector<8xf32>
    %23 = vector.shape_cast %22 : vector<8xf32> to vector<8x1xf32>
    %24 = arith.subf %11, %12 : vector<8x1xf32>
    %25 = math.exp %24 : vector<8x1xf32>
    %c0_9 = arith.constant 0 : index
    %c0_10 = arith.constant 0 : index
    %26 = vector.load %arg6[%c0_9, %c0_10] : memref<8x1xf32, #tpu.memory_space<vmem>>, vector<8x1xf32>
    %27 = arith.mulf %25, %26 : vector<8x1xf32>
    %28 = arith.addf %27, %21 : vector<8x1xf32>
    %c0_11 = arith.constant 0 : index
    %c0_12 = arith.constant 0 : index
    %29 = vector.load %arg6[%c0_11, %c0_12] : memref<8x1xf32, #tpu.memory_space<vmem>>, vector<8x1xf32>
    tpu.vector_store %arg6[%c0_11, %c0_12], %28 {strides = array<i32>} : memref<8x1xf32, #tpu.memory_space<vmem>>, vector<8x1xf32>,
    %c0_13 = arith.constant 0 : index
    %c0_14 = arith.constant 0 : index
    %30 = vector.load %arg5[%c0_13, %c0_14] : memref<8x1xf32, #tpu.memory_space<vmem>>, vector<8x1xf32>
    tpu.vector_store %arg5[%c0_13, %c0_14], %12 {strides = array<i32>} : memref<8x1xf32, #tpu.memory_space<vmem>>, vector<8x1xf32>,
    %c0_15 = arith.constant 0 : index
    %c0_16 = arith.constant 0 : index
    %31 = vector.load %arg7[%c0_15, %c0_16] : memref<8x1xf32, #tpu.memory_space<vmem>>, vector<8x1xf32>
    %32 = arith.addf %31, %23 : vector<8x1xf32>
    %c0_17 = arith.constant 0 : index
    %c0_18 = arith.constant 0 : index
    %33 = vector.load %arg7[%c0_17, %c0_18] : memref<8x1xf32, #tpu.memory_space<vmem>>, vector<8x1xf32>
    tpu.vector_store %arg7[%c0_17, %c0_18], %32 {strides = array<i32>} : memref<8x1xf32, #tpu.memory_space<vmem>>, vector<8x1xf32>,
    %c0_i32_19 = arith.constant 0 : i32
    %34 = arith.cmpi eq, %arg1, %c0_i32_19 : i32
    %35 = arith.extui %34 : i1 to i32
    %c0_i32_20 = arith.constant 0 : i32
    %36 = arith.cmpi ne, %35, %c0_i32_20 : i32
    scf.if %36 {
      %c0_21 = arith.constant 0 : index
      %c0_22 = arith.constant 0 : index
      %37 = vector.load %arg5[%c0_21, %c0_22] : memref<8x1xf32, #tpu.memory_space<vmem>>, vector<8x1xf32>
      %c0_23 = arith.constant 0 : index
      %c0_24 = arith.constant 0 : index
      %38 = vector.load %arg6[%c0_23, %c0_24] : memref<8x1xf32, #tpu.memory_space<vmem>>, vector<8x1xf32>
      %39 = math.log %38 : vector<8x1xf32>
      %40 = arith.addf %37, %39 : vector<8x1xf32>
      %c0_25 = arith.constant 0 : index
      %c0_26 = arith.constant 0 : index
      %41 = vector.load %arg7[%c0_25, %c0_26] : memref<8x1xf32, #tpu.memory_space<vmem>>, vector<8x1xf32>
      %42 = arith.subf %40, %41 : vector<8x1xf32>
      %c0_27 = arith.constant 0 : index
      %c0_28 = arith.constant 0 : index
      %43 = vector.load %arg4[%c0_27, %c0_28] : memref<8x1xf32, #tpu.memory_space<vmem>>, vector<8x1xf32>
      tpu.vector_store %arg4[%c0_27, %c0_28], %42 {strides = array<i32>} : memref<8x1xf32, #tpu.memory_space<vmem>>, vector<8x1xf32>,
    } else {
    }
    return
  }
  func.func @transform_0(%arg0: i32, %arg1: i32) -> (i32, i32) {
    %c0_i32 = arith.constant 0 : i32
    return %arg0, %arg1 : i32, i32
  }
  func.func @transform_1(%arg0: i32, %arg1: i32) -> (i32, i32) {
    %c0_i32 = arith.constant 0 : i32
    %c0_i32_0 = arith.constant 0 : i32
    return %arg0, %c0_i32 : i32, i32
  }
  func.func @transform_2(%arg0: i32, %arg1: i32) -> (i32, i32) {
    %c0_i32 = arith.constant 0 : i32
    %c0_i32_0 = arith.constant 0 : i32
    return %arg0, %c0_i32 : i32, i32
  }
}

</mosaic_0001>

<bundles_post_ra>
// kernel: tpu_custom_call.1
= control target key start
LH: loop header
LB: loop body
LE: loop exit
PB: predicated region body
PF: predicated region fallthrough
CT: control target
= control target key end

     0   :  { %vm26_vm0 = vcmask 261120   ;;  %vm15_vm1 = vcmask 7168   ;;  %v89_v1 = vmov -inf   ;;  %v90_v3 = vmov 0   ;;  %s126_s0 = inlined_call_operand.vmem [shape: f32[8,32], index: 0, kind: input, shape index: {}]   ;;  %s127_s1 = inlined_call_operand.vmem [shape: s32[8,1], index: 1, kind: input, shape index: {}]   ;;  %s128_s2 = inlined_call_operand.vmem [shape: f32[8,1], index: 2, kind: output, shape index: {}]  }
   0x1   :  { %v19_v0 = vld [vmem:[%s126_s0] sm:$0xff]  ;;  %16 = vst.msk [vmem:[#allocation2] sm:$0xff] %vm15_vm1, %v89_v1  ;;  %81 = vset.pattern.permute.xlu0 %v90_v3  ;;  %82 = vset.pattern.permute.xlu1 %v90_v3  ;;  %v91_v4 = vmov 0.0   ;;  %v24_v13 = vlaneseq }
   0x2   :  { %v27_v2 = vsel %vm26_vm0, %v19_v0, -inf  ;;  %17 = vst.msk [vmem:[#allocation3] sm:$0xff] %vm15_vm1, %v91_v4  ;;  %18 = vst.msk [vmem:[#allocation4] sm:$0xff] %vm15_vm1, %v91_v4  ;;  %v20_v5 = vld [vmem:[%s127_s1] sm:$0xff] }
   0x3   :  { %28 = vmax.xlane.f32.xlu0 %v27_v2  ;;  %41 = vperm.xlu1 %82, %v20_v5   ;;  %v25_v14 = vand.u32 127, %v24_v13 }
   0x8   :  { %v30_v6 = vld [vmem:[#allocation2] sm:$0xff] }
   0x9   :  { %v54_v22 = vld [vmem:[#allocation3] sm:$0xff]  ;;  %v60_v26 = vld [vmem:[#allocation4] sm:$0xff] }
  0x82   :  { %v42_v15 = vpop.permute.xlu1 %41 }
  0x83   :  { %vm43_vm2 = vcmp.eq.s32.totalorder %v25_v14, %v42_v15 }
  0x84   :  { %v44_v17 = vsel %vm43_vm2, %v19_v0, 0.0 }
  0x85   :  { %v48_v19 = vsel %vm26_vm0, %v44_v17, 0.0 }
  0x90   :  { %v29_v7 = vpop.xlane.xlu0 %28 }
  0x91   :  { %v31_v8 = vmax.f32 %v30_v6, %v29_v7 }
  0x93   :  { %v51_v9 = vsub.f32 %v30_v6, %v31_v8  ;;  %59 = vst.msk [vmem:[#allocation2] sm:$0xff] %vm15_vm1, %v31_v8  ;;  %34 = vperm.xlu0 %81, %v31_v8  }
  0x95   :  { %v52_v20 = vmul.f32 1.442695, %v51_v9 }
  0x9a   :  { %v66_v32 = vld [vmem:[#allocation2] sm:$0xff] }
 0x112   :  { %v35_v10 = vpop.permute.xlu0 %34 }
 0x113   :  { %v37_v11 = vsub.f32 %v19_v0, %v35_v10 }
 0x115   :  { %v38_v12 = vmul.f32 1.442695, %v37_v11 }
 0x117   :  { %83 = vpow2.f32 %v38_v12 }
 0x118   :  { %85 = vpow2.f32 %v52_v20 }
 0x121   :  { %v84_v16 = vpop.eup %83 }
 0x122   :  { %v45_v18 = vsel %vm26_vm0, %v84_v16, 0.0  ;;  %v86_v21 = vpop.eup %85 }
 0x123   :  { %46 = vadd.xlane.f32.xlu1 %v45_v18  ;;  %v55_v23 = vmul.f32 %v86_v21, %v54_v22 }
 0x127   :  { %49 = vadd.xlane.f32.xlu1 %v48_v19 }
 0x1b0   :  { %v47_v24 = vpop.xlane.xlu1 %46 }
 0x1b1   :  { %v56_v25 = vadd.f32 %v55_v23, %v47_v24 }
 0x1b3   :  { %58 = vst.msk [vmem:[#allocation3] sm:$0xff] %vm15_vm1, %v56_v25 }
 0x1b4   :  { %v50_v27 = vpop.xlane.xlu1 %49 }
 0x1b5   :  { %v61_v28 = vadd.f32 %v60_v26, %v50_v27 }
 0x1b7   :  { %62 = vst.msk [vmem:[#allocation4] sm:$0xff] %vm15_vm1, %v61_v28 }
 0x1ba   :  { %v67_v29 = vld [vmem:[#allocation3] sm:$0xff] }
 0x1bb   :  { %87 = vlog2.f32 %v67_v29 }
 0x1be   :  { %v71_v33 = vld [vmem:[#allocation4] sm:$0xff] }
 0x1c5   :  { %v88_v30 = vpop.eup %87 }
 0x1c6   :  { %v69_v31 = vmul.f32 0.6931472, %v88_v30 }
 0x1c8   :  { %v70_v34 = vadd.f32 %v69_v31, %v66_v32 }
 0x1ca   :  { %v72_v35 = vsub.f32 %v70_v34, %v71_v33 }
 0x1cc   :  { %73 = vst.msk [vmem:[%s128_s2] sm:$0xff] %vm15_vm1, %v72_v35 }

</bundles_post_ra>
